<compile_context>
chip_gen: v6e
topology: v6e:2x2x1
jax: 0.10.0
libtpu: 0.0.40
codegen_flags: <defaults>
</compile_context>

<pallas_src>
import functools
import math

import jax
import jax.numpy as jnp
from jax.experimental import pallas as pl
from jax.experimental.pallas import tpu as pltpu


def _fused_gcn_kernel(layer_dims, compute_dtype, x_ref, g_ref, *rest):
    """Fused multi-layer GCN on one lane-packed batch group.

    x_ref: (N, bt*C_in0)   batch packed into lanes, (batch, feature) order
    g_ref: (N, N)          normalized graph D^-1 (A + I)
    rest : (w0, ..., wL-1, out) with wi block-diagonal kron(I_bt, Wi)
    """
    n_layers = len(layer_dims)
    w_refs, o_ref = rest[:n_layers], rest[n_layers]

    g = g_ref[...].astype(compute_dtype)            # (N, N)
    h = x_ref[...]                                  # (N, bt*C_in0)

    for i, ((c_in, c_out), w_ref) in enumerate(zip(layer_dims, w_refs)):
        w = w_ref[...].astype(compute_dtype)        # (bt*c_in, bt*c_out) block-diag
        hc = h.astype(compute_dtype)
        if c_in < c_out:
            # Aggregate first over the narrower feature width:  (G @ x) @ W.
            agg = jnp.dot(g, hc, preferred_element_type=jnp.float32)
            out = jnp.dot(agg.astype(compute_dtype), w,
                          preferred_element_type=jnp.float32)
        else:
            # Transform first:  G @ (x @ W).
            t = jnp.dot(hc, w, preferred_element_type=jnp.float32)
            out = jnp.dot(g, t.astype(compute_dtype),
                          preferred_element_type=jnp.float32)
        # act3 = tanh on all but the last layer; kept in f32 (v5e EUP has no bf16).
        h = jnp.tanh(out) if i != n_layers - 1 else out

    o_ref[...] = h.astype(o_ref.dtype)


def _pick_batch_tile(layer_dims, *, lane=128, mxu_tile=256):
    """Batch-group size: lane-dense output stores, bounded kron waste.

    Smallest bt such that bt*c_out_last is a multiple of 128 (unmasked vst), as
    long as bt*max_c fits one MXU tile pass (256-wide on v6e/v7x; v5e users can
    pass mxu_tile=128 and accept narrower output stores).  Otherwise the largest
    bt under the MXU cap.
    """
    c_out_last = layer_dims[-1][1]
    max_c = max(max(ci, co) for ci, co in layer_dims)
    bt = lane // math.gcd(lane, c_out_last)
    if bt * max_c <= mxu_tile:
        return bt
    return max(1, mxu_tile // max_c)


def _vmem_limit_bytes(frac=0.75):
    """Scoped-VMEM budget: a fraction of this generation's physical VMEM."""
    try:
        cap = int(pltpu.get_tpu_info().vmem_capacity_bytes)
    except Exception:              # query unavailable (e.g. interpret mode)
        cap = 64 * 1024 * 1024     # v7x floor: safe on every generation
    return int(cap * frac)


def process_graph(graph):
    """JAX port of GCN.process_graph: D^-1 (A + I). Plain-JAX glue (runs once)."""
    N = graph.shape[0]
    g = graph + jnp.eye(N, dtype=graph.dtype)
    deg = jnp.sum(g, axis=-1)
    inv = jnp.where(deg == 0.0, 0.0, 1.0 / deg)
    return inv[:, None] * g


def gcn_forward(flow_x, graph, weights_t, *, compute_dtype=jnp.float32,
                out_dtype=jnp.float32, batch_tile=None, return_packed=False):
    """Reproduces GCN.forward: output_g of the last layer, [B, N, out_c].

    weights_t: list of Linear weights stored pre-transposed as [C_in, C_out]
               (PyTorch nn.Linear keeps [out, in]; x @ W.T == x @ W_t).
    return_packed=True returns the lane-packed (N, B_pad*out_c) slab instead,
    letting downstream consumers skip the wrapper-side unpack transpose.
    """
    B, N = flow_x.shape[0], flow_x.shape[1]
    x = flow_x.reshape(B, N, -1)                    # view(B, N, -1)
    c_in0 = x.shape[-1]
    layer_dims = tuple((int(w.shape[0]), int(w.shape[1])) for w in weights_t)
    assert layer_dims[0][0] == c_in0
    c_out_last = layer_dims[-1][1]
    n_layers = len(layer_dims)

    if batch_tile is None:
        batch_tile = _pick_batch_tile(layer_dims)

    # Zero-pad the batch so every group is full and the output stays lane-dense.
    B_pad = int(pl.cdiv(B, batch_tile)) * batch_tile
    if B_pad != B:
        x = jnp.pad(x, ((0, B_pad - B), (0, 0), (0, 0)))
    n_groups = B_pad // batch_tile

    # ---- layout plumbing (plain XLA, outside the kernel) ---------------------
    # Pack batch into lanes: [B_pad, N, C] -> [N, B_pad*C], lanes ordered (b, c).
    x_packed = jnp.transpose(x, (1, 0, 2)).reshape(N, B_pad * c_in0)
    x_packed = x_packed.astype(compute_dtype)
    graph_c = graph.astype(compute_dtype)
    # Block-diagonal (Kronecker) weights: the per-group feature transform becomes
    # one plain 2-D matmul on the packed layout; batch_tile is capped so this stays
    # within a single MXU tile pass (bounded zero-padding waste).
    eye_bt = jnp.eye(batch_tile, dtype=compute_dtype)
    w_kron = [jnp.kron(eye_bt, w.astype(compute_dtype)) for w in weights_t]

    # ---- cost estimate (scheduling hint) --------------------------------------
    itemsize = jnp.dtype(compute_dtype).itemsize
    flops = 0
    transcendentals = 0
    for i, (ci, co) in enumerate(layer_dims):
        flops += 2 * N * N * B_pad * min(ci, co)            # graph aggregation
        flops += 2 * N * B_pad * ci * co * batch_tile       # block-diag transform
        if i != n_layers - 1:
            transcendentals += N * B_pad * co               # tanh
    bytes_accessed = (
        x_packed.size * itemsize + graph_c.size * itemsize
        + sum(w.size * itemsize for w in w_kron)
        + N * B_pad * c_out_last * jnp.dtype(out_dtype).itemsize
    )

    kernel = functools.partial(_fused_gcn_kernel, layer_dims, compute_dtype)

    invariant = pl.Buffered(1)     # graph / weights never change across grid steps
    in_specs = [
        # x: lane-blocked over batch groups (default double-buffering).
        pl.BlockSpec((N, batch_tile * c_in0), lambda gi: (0, gi)),
        # graph: full block, grid-invariant -> single-buffered.
        pl.BlockSpec((N, N), lambda gi: (0, 0), pipeline_mode=invariant),
    ] + [
        # block-diagonal weights: full blocks, grid-invariant -> single-buffered.
        pl.BlockSpec((batch_tile * ci, batch_tile * co), lambda gi: (0, 0),
                     pipeline_mode=invariant)
        for (ci, co) in layer_dims
    ]
    out_spec = pl.BlockSpec((N, batch_tile * c_out_last), lambda gi: (0, gi))

    out_packed = pl.pallas_call(
        kernel,
        out_shape=jax.ShapeDtypeStruct((N, B_pad * c_out_last), out_dtype),
        grid_spec=pltpu.PrefetchScalarGridSpec(
            num_scalar_prefetch=0,
            grid=(n_groups,),
            in_specs=in_specs,
            out_specs=out_spec,
        ),
        compiler_params=pltpu.CompilerParams(
            dimension_semantics=("parallel",),
            vmem_limit_bytes=_vmem_limit_bytes(),
        ),
        cost_estimate=pl.CostEstimate(
            flops=int(flops),
            transcendentals=int(transcendentals),
            bytes_accessed=int(bytes_accessed),
        ),
    )(x_packed, graph_c, *w_kron)

    if return_packed:
        return out_packed
    # Unpack lanes back to [B, N, out_c] (a separate XLA relayout; consumers that
    # can eat the packed layout should pass return_packed=True).
    return out_packed.reshape(N, B_pad, c_out_last).transpose(1, 0, 2)[:B]


if __name__ == "__main__":
    key = jax.random.PRNGKey(0)

    # Small shapes consistent with the module:
    B, N, T, D = 2, 16, 2, 4          # flow_x: [B, N, T, D] -> view(B, N, in_c)
    in_c, hid_c, out_c = T * D, 32, 16

    k1, k2, k3, k4 = jax.random.split(key, 4)
    flow_x = jax.random.normal(k1, (B, N, T, D), dtype=jnp.float32)
    adj = (jax.random.uniform(k2, (N, N), dtype=jnp.float32) > 0.7).astype(jnp.float32)
    adj = jnp.maximum(adj, adj.T)     # symmetric adjacency
    graph = process_graph(adj)

    # Deterministic Linear weights (bias=False), stored as [in, out] (transposed).
    w0_t = 0.1 * jax.random.normal(k3, (in_c, hid_c), dtype=jnp.float32)
    w1_t = 0.1 * jax.random.normal(k4, (hid_c, out_c), dtype=jnp.float32)
    weights_t = [w0_t, w1_t]

    # Pure-JAX reference (same math, no Pallas).
    x_ref = flow_x.reshape(B, N, -1)
    h_ref = jnp.tanh(jnp.einsum("nm,bmc->bnc", graph, x_ref @ w0_t))
    ref = jnp.einsum("nm,bmc->bnc", graph, h_ref @ w1_t)

    # f32 path: tight check.
    out_f32 = jax.block_until_ready(gcn_forward(flow_x, graph, weights_t))
    assert out_f32.shape == (B, N, out_c)
    assert jnp.allclose(out_f32, ref, atol=1e-5, rtol=1e-5)

    # bf16 MXU-input path (f32 accumulation / f32 tanh): loose check.
    out_bf16 = jax.block_until_ready(
        gcn_forward(flow_x, graph, weights_t, compute_dtype=jnp.bfloat16))
    assert out_bf16.shape == (B, N, out_c)
    assert jnp.allclose(out_bf16, ref, atol=3e-2, rtol=5e-2)

    print("KERNEL_OK")
</pallas_src>

<mosaic_0001>
module attributes {stable_mosaic.version = 11 : i64} {
  func.func @_fused_gcn_kernel(%arg0: i32, %arg1: memref<16x64xf32, #tpu.memory_space<vmem>>, %arg2: memref<16x16xf32, #tpu.memory_space<vmem>>, %arg3: memref<64x256xf32, #tpu.memory_space<vmem>>, %arg4: memref<256x128xf32, #tpu.memory_space<vmem>>, %arg5: memref<16x128xf32, #tpu.memory_space<vmem>>) attributes {dimension_semantics = [#tpu.dimension_semantics<parallel>], iteration_bounds = array<i64: 1>, scalar_prefetch = 0 : i64, scratch_operands = 0 : i64, tpu.core_type = #tpu.core_type<tc>, window_params = [{transform_indices = @transform_0, window_bounds = array<i64: 16, 64>}, {pipeline_mode = #tpu.pipeline_mode<synchronous>, transform_indices = @transform_1, window_bounds = array<i64: 16, 16>}, {pipeline_mode = #tpu.pipeline_mode<synchronous>, transform_indices = @transform_2, window_bounds = array<i64: 64, 256>}, {pipeline_mode = #tpu.pipeline_mode<synchronous>, transform_indices = @transform_3, window_bounds = array<i64: 256, 128>}, {transform_indices = @transform_4, window_bounds = array<i64: 16, 128>}]} {
    %c0 = arith.constant 0 : index
    %c0_0 = arith.constant 0 : index
    %0 = vector.load %arg2[%c0, %c0_0] : memref<16x16xf32, #tpu.memory_space<vmem>>, vector<16x16xf32>
    %c0_1 = arith.constant 0 : index
    %c0_2 = arith.constant 0 : index
    %1 = vector.load %arg1[%c0_1, %c0_2] : memref<16x64xf32, #tpu.memory_space<vmem>>, vector<16x64xf32>
    %c0_3 = arith.constant 0 : index
    %c0_4 = arith.constant 0 : index
    %2 = vector.load %arg3[%c0_3, %c0_4] : memref<64x256xf32, #tpu.memory_space<vmem>>, vector<64x256xf32>
    %cst = arith.constant dense<0.000000e+00> : vector<16x64xf32>
    %3 = tpu.matmul %0, %1, %cst {dimension_numbers = #tpu.dot_dimension_numbers<[1], [0], [0], [1], [0, 0, 1, 1], [], []>} : vector<16x16xf32>, vector<16x64xf32>, vector<16x64xf32> -> vector<16x64xf32>
    %cst_5 = arith.constant dense<0.000000e+00> : vector<16x256xf32>
    %4 = tpu.matmul %3, %2, %cst_5 {dimension_numbers = #tpu.dot_dimension_numbers<[1], [0], [0], [1], [0, 0, 1, 1], [], []>} : vector<16x64xf32>, vector<64x256xf32>, vector<16x256xf32> -> vector<16x256xf32>
    %5 = math.tanh %4 : vector<16x256xf32>
    %c0_6 = arith.constant 0 : index
    %c0_7 = arith.constant 0 : index
    %6 = vector.load %arg4[%c0_6, %c0_7] : memref<256x128xf32, #tpu.memory_space<vmem>>, vector<256x128xf32>
    %cst_8 = arith.constant dense<0.000000e+00> : vector<16x128xf32>
    %7 = tpu.matmul %5, %6, %cst_8 {dimension_numbers = #tpu.dot_dimension_numbers<[1], [0], [0], [1], [0, 0, 1, 1], [], []>} : vector<16x256xf32>, vector<256x128xf32>, vector<16x128xf32> -> vector<16x128xf32>
    %cst_9 = arith.constant dense<0.000000e+00> : vector<16x128xf32>
    %8 = tpu.matmul %0, %7, %cst_9 {dimension_numbers = #tpu.dot_dimension_numbers<[1], [0], [0], [1], [0, 0, 1, 1], [], []>} : vector<16x16xf32>, vector<16x128xf32>, vector<16x128xf32> -> vector<16x128xf32>
    %c0_10 = arith.constant 0 : index
    %c0_11 = arith.constant 0 : index
    %9 = vector.load %arg5[%c0_10, %c0_11] : memref<16x128xf32, #tpu.memory_space<vmem>>, vector<16x128xf32>
    tpu.vector_store %arg5[%c0_10, %c0_11], %8 {strides = array<i32>} : memref<16x128xf32, #tpu.memory_space<vmem>>, vector<16x128xf32>,
    return
  }
  func.func @transform_0(%arg0: i32) -> (i32, i32) {
    %c0_i32 = arith.constant 0 : i32
    %c0_i32_0 = arith.constant 0 : i32
    return %c0_i32, %arg0 : i32, i32
  }
  func.func @transform_1(%arg0: i32) -> (i32, i32) {
    %c0_i32 = arith.constant 0 : i32
    %c0_i32_0 = arith.constant 0 : i32
    %c0_i32_1 = arith.constant 0 : i32
    return %c0_i32, %c0_i32_0 : i32, i32
  }
  func.func @transform_2(%arg0: i32) -> (i32, i32) {
    %c0_i32 = arith.constant 0 : i32
    %c0_i32_0 = arith.constant 0 : i32
    %c0_i32_1 = arith.constant 0 : i32
    return %c0_i32, %c0_i32_0 : i32, i32
  }
  func.func @transform_3(%arg0: i32) -> (i32, i32) {
    %c0_i32 = arith.constant 0 : i32
    %c0_i32_0 = arith.constant 0 : i32
    %c0_i32_1 = arith.constant 0 : i32
    return %c0_i32, %c0_i32_0 : i32, i32
  }
  func.func @transform_4(%arg0: i32) -> (i32, i32) {
    %c0_i32 = arith.constant 0 : i32
    %c0_i32_0 = arith.constant 0 : i32
    return %c0_i32, %arg0 : i32, i32
  }
}

</mosaic_0001>

<bundles_post_ra>
// kernel: tpu_custom_call.1
= control target key start
LH: loop header
LB: loop body
LE: loop exit
PB: predicated region body
PF: predicated region fallthrough
CT: control target
= control target key end

     0   :  { %9 = vsyncpa [#allocation3], 0  ;;  %s732_s0 = inlined_call_operand.hbm [shape: f32[16,64], index: 0, kind: input, shape index: {}]   ;;  %s733_s1 = inlined_call_operand.hbm [shape: f32[16,16], index: 1, kind: input, shape index: {}]   ;;  %s734_s2 = inlined_call_operand.hbm [shape: f32[64,256], index: 2, kind: input, shape index: {}]   ;;  %s735_s3 = inlined_call_operand.hbm [shape: f32[256,128], index: 3, kind: input, shape index: {}]   ;;  %s736_s4 = inlined_call_operand.hbm [shape: f32[16,128], index: 4, kind: output, shape index: {}]  }
   0x1   :  { %10 = vsyncpa [#allocation6], 0 }
   0x2   :  { %11 = vsyncpa [#allocation9], 0 }
   0x3   :  { %12 = vsyncpa [#allocation4], 0  ;;  %s658_s15 = smov [#allocation5]   ;;  %s659_s17 = smov [#allocation2]  }
   0x4   :  { %s30_s16 = sshll.u32 %s658_s15, 4  ;;  %s18_s18 = sshll.u32 %s659_s17, 4  ;;  %s31_s16 = int_to_ptr.vmem [resolvable:$true] %s30_s16  ;;  %s19_s18 = int_to_ptr.vmem [resolvable:$true] %s18_s18 }
   0x5   :  { %s558_s19 = scalar_lea.vmem %s31_s16, 256  ;;  %p563_p1 = scmp.lt.s32.totalorder %s31_s16, %s31_s16 }
   0x6   :  { %p559_p0 = scmp.ne.s32.totalorder %s31_s16, %s558_s19  ;;  %p564_p2 = scmp.lt.s32.totalorder %s558_s19, %s558_s19 }
   0x8   :  { %p565_p3 = por %p564_p2, %p563_p1 }
   0xa   :  { %p566_p4 = pnand %p565_p3, %p559_p0 }
   0xc   :  { %569 = shalt.err (!%p566_p4)
}
   0xd   :  { %s660_s20 = smov 128   ;;  %s661_s21 = smov 8  }
   0xe   :  { %36 = dma.hbm_to_vmem [thread:$0]  %s733_s1, 256, %s31_s16, [#allocation6], %s660_s20, %s660_s20, %s661_s21  }
   0xf   :  { %s578_s24 = scalar_lea.vmem %s19_s18, 256  ;;  %p583_p6 = scmp.lt.s32.totalorder %s19_s18, %s19_s18 }
  0x10   :  { %p579_p5 = scmp.ne.s32.totalorder %s19_s18, %s578_s24  ;;  %p584_p7 = scmp.lt.s32.totalorder %s578_s24, %s578_s24 }
  0x12   :  { %p585_p8 = por %p584_p7, %p583_p6 }
  0x14   :  { %p586_p9 = pnand %p585_p8, %p579_p5 }
  0x16   :  { %589 = shalt.err (!%p586_p9)
}
  0x17   :  { %24 = dma.hbm_to_vmem [thread:$0]  %s732_s0, 256, %s19_s18, [#allocation3], %s660_s20, %s660_s20, %s661_s21  }
  0x18   :  { %s662_s27 = smov [#allocation7]  }
  0x19   :  { %s42_s28 = sshll.u32 %s662_s27, 4  ;;  %s43_s28 = int_to_ptr.vmem [resolvable:$true] %s42_s28 }
  0x1a   :  { %s598_s29 = scalar_lea.vmem %s43_s28, 2048  ;;  %p603_p11 = scmp.lt.s32.totalorder %s43_s28, %s43_s28 }
  0x1b   :  { %p599_p10 = scmp.ne.s32.totalorder %s43_s28, %s598_s29  ;;  %p604_p12 = scmp.lt.s32.totalorder %s598_s29, %s598_s29 }
  0x1d   :  { %p605_p13 = por %p604_p12, %p603_p11 }
  0x1f   :  { %p606_p0 = pnand %p605_p13, %p599_p10 }
  0x21   :  { %609 = shalt.err (!%p606_p0)
}
  0x22   :  { %s663_s1 = smov 256   ;;  %s664_s30 = smov 16  }
  0x23   :  { %48 = dma.hbm_to_vmem [thread:$0]  %s734_s2, 2048, %s43_s28, [#allocation6], %s663_s1, %s663_s1, %s664_s30  }
  0x24   :  { %s665_s7 = smov [#allocation8]  }
  0x25   :  { %s54_s8 = sshll.u32 %s665_s7, 4  ;;  %s55_s8 = int_to_ptr.vmem [resolvable:$true] %s54_s8 }
  0x26   :  { %s618_s0 = scalar_lea.vmem %s55_s8, 4096  ;;  %p623_p2 = scmp.lt.s32.totalorder %s55_s8, %s55_s8 }
  0x27   :  { %p619_p1 = scmp.ne.s32.totalorder %s55_s8, %s618_s0  ;;  %p624_p3 = scmp.lt.s32.totalorder %s618_s0, %s618_s0 }
  0x29   :  { %p625_p4 = por %p624_p3, %p623_p2 }
  0x2b   :  { %p626_p5 = pnand %p625_p4, %p619_p1 }
  0x2d   :  { %629 = shalt.err (!%p626_p5)
}
  0x2e   :  { %60 = dma.hbm_to_vmem [thread:$0]  %s735_s3, 4096, %s55_s8, [#allocation9], %s660_s20, %s660_s20, %s661_s21  }
  0x2f   :  { %650 = dma.done.wait [#allocation3], 256  }
  0x30   :  { %651 = vsyncadd [#allocation3], 4294967040 }
  0x31   :  { %652 = dma.done.wait [#allocation6], 2304  }
  0x32   :  { %653 = vsyncadd [#allocation6], 4294964992 }
  0x33   :  { %654 = dma.done.wait [#allocation9], 4096  }
  0x34   :  { %655 = vsyncadd [#allocation9], 4294963200  ;;  %vm93_vm0 = vcmask 130048   ;;  %v76_v0 = vld [vmem:[#allocation2 + $0x8] sm:$0xff]  ;;  %v75_v1 = vld [vmem:[#allocation2] sm:$0xff]  ;;  %v666_v20 = vmov 0.0  }
  0x35   :  { %v714_v2 = vld [vmem:[#allocation5] sm:$0xff]  ;;  %518 = vmatprep.subr.mxu1 %v76_v0  ;;  %v718_v3 = vld [vmem:[#allocation5 + $0x8] sm:$0xff]  ;;  %v90_v6 = vld [vmem:[#allocation7 + $0x68] sm:$0xff]  ;;  %vm175_vm1 = vcmask 523264   ;;  %s667_s2 = smov [#allocation10]  }
  0x36   :  { %522 = vmatprep.mubr.msk.f32.mxu1 %vm93_vm0, %v714_v2  ;;  %519 = vmatpush3.msra.mxu1 %v76_v0  ;;  %v92_v4 = vld [vmem:[#allocation7 + $0x78] sm:$0xff]  ;;  %v91_v5 = vld [vmem:[#allocation7 + $0x70] sm:$0xff]  ;;  %v89_v7 = vld [vmem:[#allocation7 + $0x60] sm:$0xff]  ;;  %s452_s3 = sshll.u32 %s667_s2, 4  ;;  %s453_s3 = int_to_ptr.vmem [resolvable:$true] %s452_s3 }
  0x37   :  { %520 = vmatprep.subr.mxu1 %v75_v1  ;;  %v88_v8 = vld [vmem:[#allocation7 + $0x58] sm:$0xff]  ;;  %v87_v9 = vld [vmem:[#allocation7 + $0x50] sm:$0xff]  ;;  %v86_v10 = vld [vmem:[#allocation7 + $0x48] sm:$0xff]  ;;  %s630_s11 = scalar_lea.vmem %s453_s3, 256  ;;  %p635_p7 = scmp.lt.s32.totalorder %s453_s3, %s453_s3 }
  0x38   :  { %521 = vmatpush3.msra.mxu1 %v75_v1  ;;  %v85_v11 = vld [vmem:[#allocation7 + $0x40] sm:$0xff]  ;;  %v84_v12 = vld [vmem:[#allocation7 + $0x38] sm:$0xff]  ;;  %v83_v13 = vld [vmem:[#allocation7 + $0x30] sm:$0xff]  ;;  %p631_p6 = scmp.ne.s32.totalorder %s453_s3, %s630_s11  ;;  %p636_p8 = scmp.lt.s32.totalorder %s630_s11, %s630_s11 }
  0x39   :  { %523 = vmatmul.mubr.msk.f32.vlgmr.msra.gmra.mxu1 %vm93_vm0, %v718_v3  ;;  %198 = vmatprep.subr.mxu1 %v92_v4  ;;  %v82_v14 = vld [vmem:[#allocation7 + $0x28] sm:$0xff]  ;;  %v81_v15 = vld [vmem:[#allocation7 + $0x20] sm:$0xff]  ;;  %v80_v16 = vld [vmem:[#allocation7 + $0x18] sm:$0xff] }
  0x3a   :  { %199 = vmatpush1.msra.mxu1 %v91_v5  ;;  %v79_v17 = vld [vmem:[#allocation7 + $0x10] sm:$0xff]  ;;  %v78_v18 = vld [vmem:[#allocation7 + $0x8] sm:$0xff]  ;;  %v77_v19 = vld [vmem:[#allocation7] sm:$0xff]  ;;  %246 = vmatprep.mubr.f32.mxu1 %v666_v20  ;;  %p637_p9 = por %p636_p8, %p635_p7 }
  0x3b   :  { %200 = vmatprep.subr.mxu1 %v90_v6  ;;  %v294_v21 = vld [vmem:[#allocation8 + $0xf8] sm:$0xff]  ;;  %v293_v23 = vld [vmem:[#allocation8 + $0xf0] sm:$0xff]  ;;  %v292_v25 = vld [vmem:[#allocation8 + $0xe8] sm:$0xff] }
  0x3c   :  { %201 = vmatpush1.msra.mxu1 %v89_v7  ;;  %v278_v22 = vld [vmem:[#allocation8 + $0x78] sm:$0xff]  ;;  %476 = vmatprep.subr.mxu0 %v294_v21  ;;  %v277_v24 = vld [vmem:[#allocation8 + $0x70] sm:$0xff]  ;;  %v276_v26 = vld [vmem:[#allocation8 + $0x68] sm:$0xff]  ;;  %p638_p10 = pnand %p637_p9, %p631_p6 }
  0x3d   :  { %202 = vmatprep.subr.mxu1 %v88_v8  ;;  %477 = vmatpush3.msra.mxu0 %v278_v22  ;;  %v291_v27 = vld [vmem:[#allocation8 + $0xe0] sm:$0xff]  ;;  %v290_v29 = vld [vmem:[#allocation8 + $0xd8] sm:$0xff]  ;;  %v289_v31 = vld [vmem:[#allocation8 + $0xd0] sm:$0xff] }
  0x3e   :  { %203 = vmatpush1.msra.mxu1 %v87_v9  ;;  %478 = vmatprep.subr.mxu0 %v293_v23  ;;  %v275_v28 = vld [vmem:[#allocation8 + $0x60] sm:$0xff]  ;;  %v274_v30 = vld [vmem:[#allocation8 + $0x58] sm:$0xff]  ;;  %v273_v32 = vld [vmem:[#allocation8 + $0x50] sm:$0xff] }
  0x3f   :  { %204 = vmatprep.subr.mxu1 %v86_v10  ;;  %479 = vmatpush3.msra.mxu0 %v277_v24  ;;  %v288_v33 = vld [vmem:[#allocation8 + $0xc8] sm:$0xff]  ;;  %v287_v37 = vld [vmem:[#allocation8 + $0xc0] sm:$0xff]  ;;  %v286_v39 = vld [vmem:[#allocation8 + $0xb8] sm:$0xff] }
  0x40   :  { %205 = vmatpush1.msra.mxu1 %v85_v11  ;;  %480 = vmatprep.subr.mxu0 %v292_v25  ;;  %v272_v34 = vld [vmem:[#allocation8 + $0x48] sm:$0xff]  ;;  %v271_v38 = vld [vmem:[#allocation8 + $0x40] sm:$0xff]  ;;  %v270_v40 = vld [vmem:[#allocation8 + $0x38] sm:$0xff] }
  0x41   :  { %206 = vmatprep.subr.mxu1 %v84_v12  ;;  %481 = vmatpush3.msra.mxu0 %v276_v26  ;;  %v285_v41 = vld [vmem:[#allocation8 + $0xb0] sm:$0xff]  ;;  %v284_v43 = vld [vmem:[#allocation8 + $0xa8] sm:$0xff]  ;;  %v283_v45 = vld [vmem:[#allocation8 + $0xa0] sm:$0xff] }
  0x42   :  { %207 = vmatpush1.msra.mxu1 %v83_v13  ;;  %482 = vmatprep.subr.mxu0 %v291_v27  ;;  %v269_v42 = vld [vmem:[#allocation8 + $0x30] sm:$0xff]  ;;  %v268_v44 = vld [vmem:[#allocation8 + $0x28] sm:$0xff]  ;;  %v267_v46 = vld [vmem:[#allocation8 + $0x20] sm:$0xff] }
  0x43   :  { %208 = vmatprep.subr.mxu1 %v82_v14  ;;  %483 = vmatpush3.msra.mxu0 %v275_v28  ;;  %v282_v47 = vld [vmem:[#allocation8 + $0x98] sm:$0xff]  ;;  %v281_v49 = vld [vmem:[#allocation8 + $0x90] sm:$0xff]  ;;  %v280_v51 = vld [vmem:[#allocation8 + $0x88] sm:$0xff] }
  0x44   :  { %209 = vmatpush1.msra.mxu1 %v81_v15  ;;  %484 = vmatprep.subr.mxu0 %v290_v29  ;;  %v266_v48 = vld [vmem:[#allocation8 + $0x18] sm:$0xff]  ;;  %v265_v50 = vld [vmem:[#allocation8 + $0x10] sm:$0xff]  ;;  %v264_v52 = vld [vmem:[#allocation8 + $0x8] sm:$0xff] }
  0x45   :  { %210 = vmatprep.subr.mxu1 %v80_v16  ;;  %485 = vmatpush3.msra.mxu0 %v274_v30  ;;  %v279_v53 = vld [vmem:[#allocation8 + $0x80] sm:$0xff] }
  0x46   :  { %211 = vmatpush1.msra.mxu1 %v79_v17  ;;  %486 = vmatprep.subr.mxu0 %v289_v31  ;;  %v263_v54 = vld [vmem:[#allocation8] sm:$0xff] }
  0x47   :  { %212 = vmatprep.subr.mxu1 %v78_v18  ;;  %487 = vmatpush3.msra.mxu0 %v273_v32 }
  0x48   :  { %213 = vmatpush1.msra.mxu1 %v77_v19  ;;  %488 = vmatprep.subr.mxu0 %v288_v33 }
  0x49   :  { %489 = vmatpush3.msra.mxu0 %v272_v34 }
  0x4a   :  { %490 = vmatprep.subr.mxu0 %v287_v37 }
  0x4b   :  { %491 = vmatpush3.msra.mxu0 %v271_v38 }
  0x4c   :  { %492 = vmatprep.subr.mxu0 %v286_v39 }
  0x4d   :  { %493 = vmatpush3.msra.mxu0 %v270_v40 }
  0x4e   :  { %494 = vmatprep.subr.mxu0 %v285_v41 }
  0x4f   :  { %495 = vmatpush3.msra.mxu0 %v269_v42 }
  0x50   :  { %496 = vmatprep.subr.mxu0 %v284_v43 }
  0x51   :  { %497 = vmatpush3.msra.mxu0 %v268_v44 }
  0x52   :  { %498 = vmatprep.subr.mxu0 %v283_v45 }
  0x53   :  { %499 = vmatpush3.msra.mxu0 %v267_v46 }
  0x54   :  { %500 = vmatprep.subr.mxu0 %v282_v47 }
  0x55   :  { %501 = vmatpush3.msra.mxu0 %v266_v48 }
  0x56   :  { %502 = vmatprep.subr.mxu0 %v281_v49 }
  0x57   :  { %503 = vmatpush3.msra.mxu0 %v265_v50 }
  0x58   :  { %504 = vmatprep.subr.mxu0 %v280_v51 }
  0x59   :  { %505 = vmatpush3.msra.mxu0 %v264_v52 }
  0x5a   :  { %506 = vmatprep.subr.mxu0 %v279_v53 }
  0x5b   :  { %507 = vmatpush3.msra.mxu0 %v263_v54 }
  0xf9   :  { %v524_v35 = vpop.f32.mrf.mxu1 }
  0xfb   :  { %v166_v36 = vpop.f32.mrf.mxu1 }
  0xfc   :  { %468 = vmatmul.mubr.msk.f32.vlgmr.msra.gmra.mxu1 %vm175_vm1, %v166_v36 }
  0xfd   :  { %252 = vmatprep.mubr.f32.mxu1 %v666_v20 }
 0x100   :  { %469 = vmatmul.mubr.msk.f32.gmra.mxu1 %vm175_vm1, %v524_v35 }
 0x101   :  { %529 = vmatprep.mubr.msk.f32.mxu1 %vm93_vm0, %v714_v2 }
 0x1bc   :  { %v248_v55 = vpop.f32.mrf.mxu1 }
 0x1be   :  { %v250_v56 = vpop.f32.mrf.mxu1 }
 0x1bf   :  { %542 = vtanh.f32 %v250_v56 }
 0x1c0   :  { %544 = vtanh.f32 %v248_v55  ;;  %v254_v57 = vpop.f32.mrf.mxu1 }
 0x1c2   :  { %v256_v58 = vpop.f32.mrf.mxu1 }
 0x1c3   :  { %546 = vtanh.f32 %v256_v58 }
 0x1c4   :  { %548 = vtanh.f32 %v254_v57 }
 0x1cc   :  { %v543_v59 = vpop.eup %542 }
 0x1cd   :  { %v545_v60 = vpop.eup %544  ;;  %359 = vmatprep.mubr.f32.mxu0 %v543_v59 }
 0x1ce   :  { %360 = vmatmul.mubr.f32.vlgmr.msra.gmra.mxu0 %v545_v60 }
 0x1d0   :  { %v547_v61 = vpop.eup %546 }
 0x1d1   :  { %v549_v62 = vpop.eup %548  ;;  %364 = vmatprep.mubr.f32.mxu0 %v547_v61 }
 0x1d2   :  { %365 = vmatmul.mubr.f32.gmra.mxu0 %v549_v62 }
 0x28e   :  { %v508_v63 = vpop.f32.mrf.mxu0 }
 0x290   :  { %v509_v0 = vpop.f32.mrf.mxu0 }
 0x291   :  { %v510_v5 = vadd.f32 %v509_v0, %v508_v63 }
 0x292   :  { %v511_v1 = vpop.f32.mrf.mxu0 }
 0x294   :  { %v512_v2 = vpop.f32.mrf.mxu0 }
 0x295   :  { %v513_v4 = vadd.f32 %v512_v2, %v511_v1 }
 0x297   :  { %525 = vmatprep.subr.mxu1 %v513_v4 }
 0x298   :  { %526 = vmatpush3.msra.mxu1 %v513_v4 }
 0x299   :  { %527 = vmatprep.subr.mxu1 %v510_v5 }
 0x29a   :  { %528 = vmatpush3.msra.mxu1 %v510_v5 }
 0x29b   :  { %530 = vmatmul.mubr.msk.f32.vlgmr.msra.gmra.mxu1 %vm93_vm0, %v718_v3 }
 0x35b   :  { %v531_v6 = vpop.f32.mrf.mxu1 }
 0x35c   :  { %446 = vst [vmem:[#allocation10 + $0x8] sm:$0xff] %v531_v6 }
 0x35d   :  { %v436_v7 = vpop.f32.mrf.mxu1 }
 0x35e   :  { %445 = vst [vmem:[#allocation10] sm:$0xff] %v436_v7 }
 0x35f   :  { %641 = shalt.err (!%p638_p10)
}
 0x360   :  { %458 = dma.vmem_to_hbm [thread:$0]  %s453_s3, 256, %s736_s4, [#allocation4], %s660_s20, %s660_s20, %s661_s21  }
 0x361   :  { %656 = dma.done.wait [#allocation4], 256  }
 0x362   :  { %657 = vsyncadd [#allocation4], 4294967040 }
 0x363   :  { %462 = vsyncpa [#allocation3], 1 }
 0x364   :  { %463 = vsyncpa [#allocation6], 1 }
 0x365   :  { %464 = vsyncpa [#allocation9], 1 }
 0x366   :  { %465 = vsyncpa [#allocation4], 1 }

</bundles_post_ra>
